<compile_context>
chip_gen: v5e
topology: v5e:2x2
jax: 0.10.0
libtpu: 0.0.40
codegen_flags: <defaults>
</compile_context>

<pallas_src>
import jax
import jax.numpy as jnp
from jax.experimental import pallas as pl
from jax.experimental.pallas import tpu as pltpu


def _make_conv1x1_pad1_leaky_kernel(cin, cout, h, w, rb):
    """out[n, co, r, :] = leaky(sum_c w[co,c] * xpad[n, c, r, :] + b[co])."""
    def kernel(w_ref, b_ref, ns_ref, x_ref, o_ref, xpad_ref):
        # w_ref: (cout*cin,) SMEM   b_ref: (cout,) SMEM   ns_ref: (1,) SMEM
        # x_ref: (1, cin, h, w) VMEM   -- whole sample, resident across row axis
        # o_ref: (1, cout, rb, w+2) VMEM -- one row-group of the padded output
        # xpad_ref: (cin, round_up(h+2, rb), w+2) f32 VMEM scratch (zero-padded x)
        rg = pl.program_id(1)

        @pl.when(rg == 0)
        def _():
            # Build the zero-padded sample once per batch element (static slices;
            # VMEM->VMEM only, no extra HBM traffic).
            xpad_ref[...] = jnp.zeros_like(xpad_ref)
            for c in range(cin):
                xpad_ref[c, 1:h + 1, 1:w + 1] = x_ref[0, c].astype(jnp.float32)

        ns = ns_ref[0]
        r0 = pl.multiple_of(rg * rb, 8)
        # Dense (rb, w+2) channel planes: full sublane + lane vreg utilization.
        xs = [xpad_ref[c, pl.ds(r0, rb), :] for c in range(cin)]
        for co in range(cout):                       # fully unrolled channel mix
            acc = xs[0] * w_ref[co * cin + 0]
            for c in range(1, cin):
                acc = acc + xs[c] * w_ref[co * cin + c]
            acc = acc + b_ref[co]
            o_ref[0, co] = jnp.where(acc > 0.0, acc, acc * ns).astype(o_ref.dtype)

    return kernel


def _pick_row_tile(hp, wp, cout, n, itemsize):
    """Multiple-of-8 row tile of the padded output.

    Targets ~1 MiB output blocks (amortizes ~0.35us/step grid overhead) while
    keeping >= ~4 total grid steps so both v7x TensorCores stay fed, and staying
    far below the scoped-VMEM budget.
    """
    full = ((hp + 7) // 8) * 8
    target_bytes = 1 << 20
    rb = (target_bytes // max(1, cout * wp * itemsize)) // 8 * 8
    rb = max(8, min(rb, full))
    while rb > 8 and n * ((hp + rb - 1) // rb) < 4:
        rb = max(8, (rb // 2) // 8 * 8)
    return rb


def conv1x1_pad1_leaky(x, weight, bias, negative_slope):
    """Conv2d(Cin->Cout, k=1, stride=1, padding=1) followed by leaky-relu."""
    N, Cin, H, W = x.shape
    Cout = weight.shape[0]
    Hp, Wp = H + 2, W + 2
    out_dtype = x.dtype
    itemsize = jnp.dtype(out_dtype).itemsize

    RB = _pick_row_tile(Hp, Wp, Cout, N, itemsize)
    n_rg = pl.cdiv(Hp, RB)
    Hpad = n_rg * RB                       # scratch rows: keeps pl.ds in-bounds

    w_flat = weight.reshape(Cout * Cin).astype(jnp.float32)   # w[co*Cin + c]
    b_vec = bias.reshape(Cout).astype(jnp.float32)
    ns = jnp.asarray(negative_slope, jnp.float32).reshape(1)

    # VMEM footprint: double-buffered resident input + padded scratch + out blocks.
    in_bytes = Cin * H * W * jnp.dtype(x.dtype).itemsize
    scratch_bytes = Cin * Hpad * Wp * 4
    out_blk_bytes = Cout * RB * Wp * itemsize
    vmem_need = 2 * in_bytes + scratch_bytes + 2 * out_blk_bytes
    vmem_limit = min(100 * 1024 * 1024,
                     max(32 * 1024 * 1024, int(vmem_need * 1.25)))

    flops = N * Hp * Wp * Cout * (2 * Cin + 3)
    bytes_accessed = (x.size * jnp.dtype(x.dtype).itemsize
                      + N * Cout * Hp * Wp * itemsize
                      + (Cout * Cin + Cout + 1) * 4)

    out = pl.pallas_call(
        _make_conv1x1_pad1_leaky_kernel(Cin, Cout, H, W, RB),
        out_shape=jax.ShapeDtypeStruct((N, Cout, Hp, Wp), out_dtype),
        grid=(N, n_rg),
        in_specs=[
            pl.BlockSpec(memory_space=pltpu.MemorySpace.SMEM),   # weights (scalars)
            pl.BlockSpec(memory_space=pltpu.MemorySpace.SMEM),   # bias (scalars)
            pl.BlockSpec(memory_space=pltpu.MemorySpace.SMEM),   # negative_slope
            # Whole sample; constant block index along the row axis => DMA'd once.
            pl.BlockSpec((1, Cin, H, W), lambda n, r: (n, 0, 0, 0)),
        ],
        out_specs=pl.BlockSpec((1, Cout, RB, Wp), lambda n, r: (n, 0, r, 0)),
        scratch_shapes=[pltpu.VMEM((Cin, Hpad, Wp), jnp.float32)],
        compiler_params=pltpu.CompilerParams(
            dimension_semantics=("parallel", "arbitrary"),
            vmem_limit_bytes=vmem_limit,
        ),
        cost_estimate=pl.CostEstimate(flops=flops, transcendentals=0,
                                      bytes_accessed=bytes_accessed),
    )(w_flat, b_vec, ns, x)
    return out


def model_forward(x, negative_slope, params):
    # conv1's output (v1) is dead code in the original forward; not computed.
    return conv1x1_pad1_leaky(x, params["conv2_w"], params["conv2_b"], negative_slope)


def init_params(key):
    k1, k2, k3, k4 = jax.random.split(key, 4)
    bound = 1.0 / jnp.sqrt(3.0)   # PyTorch Conv2d default init bound, fan_in=3
    return {
        "conv1_w": jax.random.uniform(k1, (8, 3, 1, 1), jnp.float32, -bound, bound),
        "conv1_b": jax.random.uniform(k2, (8,), jnp.float32, -bound, bound),
        "conv2_w": jax.random.uniform(k3, (8, 3, 1, 1), jnp.float32, -bound, bound),
        "conv2_b": jax.random.uniform(k4, (8,), jnp.float32, -bound, bound),
    }


if __name__ == "__main__":
    key = jax.random.PRNGKey(0)
    kx, kp = jax.random.split(key)

    # Small input consistent with the module: NCHW, 3 input channels.
    x = jax.random.normal(kx, (2, 3, 16, 16), jnp.float32)
    negative_slope = 0.1
    params = init_params(kp)

    fwd = jax.jit(model_forward)
    out = jax.block_until_ready(fwd(x, negative_slope, params))

    # Plain-JAX reference: 1x1 conv == per-pixel channel matmul on padded input.
    w2 = params["conv2_w"].reshape(8, 3)
    b2 = params["conv2_b"]
    x_pad = jnp.pad(x, ((0, 0), (0, 0), (1, 1), (1, 1)))
    ref = jnp.einsum("nchw,oc->nohw", x_pad, w2) + b2[None, :, None, None]
    ref = jnp.where(ref > 0, ref, ref * negative_slope)

    assert out.shape == (2, 8, 18, 18), out.shape
    assert out.dtype == x.dtype, out.dtype
    assert jnp.allclose(out, ref, atol=1e-5, rtol=1e-5), "mismatch vs reference"

    print("KERNEL_OK")
</pallas_src>

<mosaic_0001>
module attributes {stable_mosaic.version = 11 : i64} {
  func.func @kernel(%arg0: i32, %arg1: i32, %arg2: memref<24xf32, #tpu.memory_space<smem>>, %arg3: memref<8xf32, #tpu.memory_space<smem>>, %arg4: memref<1xf32, #tpu.memory_space<smem>>, %arg5: memref<1x3x16x16xf32, #tpu.memory_space<vmem>>, %arg6: memref<1x8x8x18xf32, #tpu.memory_space<vmem>>, %arg7: memref<3x24x18xf32, #tpu.memory_space<vmem>>) attributes {dimension_semantics = [#tpu.dimension_semantics<parallel>, #tpu.dimension_semantics<arbitrary>], iteration_bounds = array<i64: 2, 3>, scalar_prefetch = 0 : i64, scratch_operands = 1 : i64, tpu.core_type = #tpu.core_type<tc>, window_params = [{transform_indices = @transform_0, window_bounds = array<i64: 24>}, {transform_indices = @transform_1, window_bounds = array<i64: 8>}, {transform_indices = @transform_2, window_bounds = array<i64: 1>}, {transform_indices = @transform_3, window_bounds = array<i64: 1, 3, 16, 16>}, {transform_indices = @transform_4, window_bounds = array<i64: 1, 8, 8, 18>}]} {
    %c0_i32 = arith.constant 0 : i32
    %0 = arith.cmpi eq, %arg1, %c0_i32 : i32
    %1 = arith.extui %0 : i1 to i32
    %c0_i32_0 = arith.constant 0 : i32
    %2 = arith.cmpi ne, %1, %c0_i32_0 : i32
    scf.if %2 {
      %cst_55 = arith.constant 0.000000e+00 : f32
      %191 = vector.broadcast %cst_55 : f32 to vector<3x24x18xf32>
      %c0_56 = arith.constant 0 : index
      %c0_57 = arith.constant 0 : index
      %c0_58 = arith.constant 0 : index
      %192 = vector.load %arg7[%c0_56, %c0_57, %c0_58] : memref<3x24x18xf32, #tpu.memory_space<vmem>>, vector<3x24x18xf32>
      tpu.vector_store %arg7[%c0_56, %c0_57, %c0_58], %191 {strides = array<i32>} : memref<3x24x18xf32, #tpu.memory_space<vmem>>, vector<3x24x18xf32>,
      %c0_59 = arith.constant 0 : index
      %c0_60 = arith.constant 0 : index
      %c0_61 = arith.constant 0 : index
      %c0_62 = arith.constant 0 : index
      %193 = vector.load %arg5[%c0_59, %c0_60, %c0_61, %c0_62] : memref<1x3x16x16xf32, #tpu.memory_space<vmem>>, vector<1x1x16x16xf32>
      %194 = vector.shape_cast %193 : vector<1x1x16x16xf32> to vector<16x16xf32>
      %c0_63 = arith.constant 0 : index
      %c1_64 = arith.constant 1 : index
      %c1_65 = arith.constant 1 : index
      %195 = vector.load %arg7[%c0_63, %c1_64, %c1_65] : memref<3x24x18xf32, #tpu.memory_space<vmem>>, vector<1x16x16xf32>
      %196 = vector.shape_cast %195 : vector<1x16x16xf32> to vector<16x16xf32>
      %197 = vector.shape_cast %194 : vector<16x16xf32> to vector<1x16x16xf32>
      tpu.vector_store %arg7[%c0_63, %c1_64, %c1_65], %197 {strides = array<i32>} : memref<3x24x18xf32, #tpu.memory_space<vmem>>, vector<1x16x16xf32>,
      %c0_66 = arith.constant 0 : index
      %c1_67 = arith.constant 1 : index
      %c0_68 = arith.constant 0 : index
      %c0_69 = arith.constant 0 : index
      %198 = vector.load %arg5[%c0_66, %c1_67, %c0_68, %c0_69] : memref<1x3x16x16xf32, #tpu.memory_space<vmem>>, vector<1x1x16x16xf32>
      %199 = vector.shape_cast %198 : vector<1x1x16x16xf32> to vector<16x16xf32>
      %c1_70 = arith.constant 1 : index
      %c1_71 = arith.constant 1 : index
      %c1_72 = arith.constant 1 : index
      %200 = vector.load %arg7[%c1_70, %c1_71, %c1_72] : memref<3x24x18xf32, #tpu.memory_space<vmem>>, vector<1x16x16xf32>
      %201 = vector.shape_cast %200 : vector<1x16x16xf32> to vector<16x16xf32>
      %202 = vector.shape_cast %199 : vector<16x16xf32> to vector<1x16x16xf32>
      tpu.vector_store %arg7[%c1_70, %c1_71, %c1_72], %202 {strides = array<i32>} : memref<3x24x18xf32, #tpu.memory_space<vmem>>, vector<1x16x16xf32>,
      %c0_73 = arith.constant 0 : index
      %c2_74 = arith.constant 2 : index
      %c0_75 = arith.constant 0 : index
      %c0_76 = arith.constant 0 : index
      %203 = vector.load %arg5[%c0_73, %c2_74, %c0_75, %c0_76] : memref<1x3x16x16xf32, #tpu.memory_space<vmem>>, vector<1x1x16x16xf32>
      %204 = vector.shape_cast %203 : vector<1x1x16x16xf32> to vector<16x16xf32>
      %c2_77 = arith.constant 2 : index
      %c1_78 = arith.constant 1 : index
      %c1_79 = arith.constant 1 : index
      %205 = vector.load %arg7[%c2_77, %c1_78, %c1_79] : memref<3x24x18xf32, #tpu.memory_space<vmem>>, vector<1x16x16xf32>
      %206 = vector.shape_cast %205 : vector<1x16x16xf32> to vector<16x16xf32>
      %207 = vector.shape_cast %204 : vector<16x16xf32> to vector<1x16x16xf32>
      tpu.vector_store %arg7[%c2_77, %c1_78, %c1_79], %207 {strides = array<i32>} : memref<3x24x18xf32, #tpu.memory_space<vmem>>, vector<1x16x16xf32>,
    } else {
    }
    %c0 = arith.constant 0 : index
    %3 = memref.load %arg4[%c0] : memref<1xf32, #tpu.memory_space<smem>>
    %c8_i32 = arith.constant 8 : i32
    %4 = arith.muli %arg1, %c8_i32 : i32
    %5 = tpu.assume_multiple %4, 8 : i32
    %c0_1 = arith.constant 0 : index
    %6 = arith.index_cast %5 : i32 to index
    %c0_2 = arith.constant 0 : index
    %7 = vector.load %arg7[%c0_1, %6, %c0_2] : memref<3x24x18xf32, #tpu.memory_space<vmem>>, vector<1x8x18xf32>
    %8 = vector.shape_cast %7 : vector<1x8x18xf32> to vector<8x18xf32>
    %c1 = arith.constant 1 : index
    %9 = arith.index_cast %5 : i32 to index
    %c0_3 = arith.constant 0 : index
    %10 = vector.load %arg7[%c1, %9, %c0_3] : memref<3x24x18xf32, #tpu.memory_space<vmem>>, vector<1x8x18xf32>
    %11 = vector.shape_cast %10 : vector<1x8x18xf32> to vector<8x18xf32>
    %c2 = arith.constant 2 : index
    %12 = arith.index_cast %5 : i32 to index
    %c0_4 = arith.constant 0 : index
    %13 = vector.load %arg7[%c2, %12, %c0_4] : memref<3x24x18xf32, #tpu.memory_space<vmem>>, vector<1x8x18xf32>
    %14 = vector.shape_cast %13 : vector<1x8x18xf32> to vector<8x18xf32>
    %c0_5 = arith.constant 0 : index
    %15 = memref.load %arg2[%c0_5] : memref<24xf32, #tpu.memory_space<smem>>
    %16 = vector.broadcast %15 : f32 to vector<8x18xf32>
    %17 = arith.mulf %8, %16 : vector<8x18xf32>
    %c1_6 = arith.constant 1 : index
    %18 = memref.load %arg2[%c1_6] : memref<24xf32, #tpu.memory_space<smem>>
    %19 = vector.broadcast %18 : f32 to vector<8x18xf32>
    %20 = arith.mulf %11, %19 : vector<8x18xf32>
    %21 = arith.addf %17, %20 : vector<8x18xf32>
    %c2_7 = arith.constant 2 : index
    %22 = memref.load %arg2[%c2_7] : memref<24xf32, #tpu.memory_space<smem>>
    %23 = vector.broadcast %22 : f32 to vector<8x18xf32>
    %24 = arith.mulf %14, %23 : vector<8x18xf32>
    %25 = arith.addf %21, %24 : vector<8x18xf32>
    %c0_8 = arith.constant 0 : index
    %26 = memref.load %arg3[%c0_8] : memref<8xf32, #tpu.memory_space<smem>>
    %27 = vector.broadcast %26 : f32 to vector<8x18xf32>
    %28 = arith.addf %25, %27 : vector<8x18xf32>
    %cst = arith.constant 0.000000e+00 : f32
    %29 = vector.broadcast %cst : f32 to vector<8x18xf32>
    %30 = arith.cmpf ogt, %28, %29 : vector<8x18xf32>
    %31 = vector.broadcast %3 : f32 to vector<8x18xf32>
    %32 = arith.mulf %28, %31 : vector<8x18xf32>
    %33 = arith.select %30, %28, %32 : vector<8x18xi1>, vector<8x18xf32>
    %c0_9 = arith.constant 0 : index
    %c0_10 = arith.constant 0 : index
    %c0_11 = arith.constant 0 : index
    %c0_12 = arith.constant 0 : index
    %34 = vector.load %arg6[%c0_9, %c0_10, %c0_11, %c0_12] : memref<1x8x8x18xf32, #tpu.memory_space<vmem>>, vector<1x1x8x18xf32>
    %35 = vector.shape_cast %34 : vector<1x1x8x18xf32> to vector<8x18xf32>
    %36 = vector.shape_cast %33 : vector<8x18xf32> to vector<1x1x8x18xf32>
    tpu.vector_store %arg6[%c0_9, %c0_10, %c0_11, %c0_12], %36 {strides = array<i32>} : memref<1x8x8x18xf32, #tpu.memory_space<vmem>>, vector<1x1x8x18xf32>,
    %c3 = arith.constant 3 : index
    %37 = memref.load %arg2[%c3] : memref<24xf32, #tpu.memory_space<smem>>
    %38 = vector.broadcast %37 : f32 to vector<8x18xf32>
    %39 = arith.mulf %8, %38 : vector<8x18xf32>
    %c4 = arith.constant 4 : index
    %40 = memref.load %arg2[%c4] : memref<24xf32, #tpu.memory_space<smem>>
    %41 = vector.broadcast %40 : f32 to vector<8x18xf32>
    %42 = arith.mulf %11, %41 : vector<8x18xf32>
    %43 = arith.addf %39, %42 : vector<8x18xf32>
    %c5 = arith.constant 5 : index
    %44 = memref.load %arg2[%c5] : memref<24xf32, #tpu.memory_space<smem>>
    %45 = vector.broadcast %44 : f32 to vector<8x18xf32>
    %46 = arith.mulf %14, %45 : vector<8x18xf32>
    %47 = arith.addf %43, %46 : vector<8x18xf32>
    %c1_13 = arith.constant 1 : index
    %48 = memref.load %arg3[%c1_13] : memref<8xf32, #tpu.memory_space<smem>>
    %49 = vector.broadcast %48 : f32 to vector<8x18xf32>
    %50 = arith.addf %47, %49 : vector<8x18xf32>
    %cst_14 = arith.constant 0.000000e+00 : f32
    %51 = vector.broadcast %cst_14 : f32 to vector<8x18xf32>
    %52 = arith.cmpf ogt, %50, %51 : vector<8x18xf32>
    %53 = vector.broadcast %3 : f32 to vector<8x18xf32>
    %54 = arith.mulf %50, %53 : vector<8x18xf32>
    %55 = arith.select %52, %50, %54 : vector<8x18xi1>, vector<8x18xf32>
    %c0_15 = arith.constant 0 : index
    %c1_16 = arith.constant 1 : index
    %c0_17 = arith.constant 0 : index
    %c0_18 = arith.constant 0 : index
    %56 = vector.load %arg6[%c0_15, %c1_16, %c0_17, %c0_18] : memref<1x8x8x18xf32, #tpu.memory_space<vmem>>, vector<1x1x8x18xf32>
    %57 = vector.shape_cast %56 : vector<1x1x8x18xf32> to vector<8x18xf32>
    %58 = vector.shape_cast %55 : vector<8x18xf32> to vector<1x1x8x18xf32>
    tpu.vector_store %arg6[%c0_15, %c1_16, %c0_17, %c0_18], %58 {strides = array<i32>} : memref<1x8x8x18xf32, #tpu.memory_space<vmem>>, vector<1x1x8x18xf32>,
    %c6 = arith.constant 6 : index
    %59 = memref.load %arg2[%c6] : memref<24xf32, #tpu.memory_space<smem>>
    %60 = vector.broadcast %59 : f32 to vector<8x18xf32>
    %61 = arith.mulf %8, %60 : vector<8x18xf32>
    %c7 = arith.constant 7 : index
    %62 = memref.load %arg2[%c7] : memref<24xf32, #tpu.memory_space<smem>>
    %63 = vector.broadcast %62 : f32 to vector<8x18xf32>
    %64 = arith.mulf %11, %63 : vector<8x18xf32>
    %65 = arith.addf %61, %64 : vector<8x18xf32>
    %c8 = arith.constant 8 : index
    %66 = memref.load %arg2[%c8] : memref<24xf32, #tpu.memory_space<smem>>
    %67 = vector.broadcast %66 : f32 to vector<8x18xf32>
    %68 = arith.mulf %14, %67 : vector<8x18xf32>
    %69 = arith.addf %65, %68 : vector<8x18xf32>
    %c2_19 = arith.constant 2 : index
    %70 = memref.load %arg3[%c2_19] : memref<8xf32, #tpu.memory_space<smem>>
    %71 = vector.broadcast %70 : f32 to vector<8x18xf32>
    %72 = arith.addf %69, %71 : vector<8x18xf32>
    %cst_20 = arith.constant 0.000000e+00 : f32
    %73 = vector.broadcast %cst_20 : f32 to vector<8x18xf32>
    %74 = arith.cmpf ogt, %72, %73 : vector<8x18xf32>
    %75 = vector.broadcast %3 : f32 to vector<8x18xf32>
    %76 = arith.mulf %72, %75 : vector<8x18xf32>
    %77 = arith.select %74, %72, %76 : vector<8x18xi1>, vector<8x18xf32>
    %c0_21 = arith.constant 0 : index
    %c2_22 = arith.constant 2 : index
    %c0_23 = arith.constant 0 : index
    %c0_24 = arith.constant 0 : index
    %78 = vector.load %arg6[%c0_21, %c2_22, %c0_23, %c0_24] : memref<1x8x8x18xf32, #tpu.memory_space<vmem>>, vector<1x1x8x18xf32>
    %79 = vector.shape_cast %78 : vector<1x1x8x18xf32> to vector<8x18xf32>
    %80 = vector.shape_cast %77 : vector<8x18xf32> to vector<1x1x8x18xf32>
    tpu.vector_store %arg6[%c0_21, %c2_22, %c0_23, %c0_24], %80 {strides = array<i32>} : memref<1x8x8x18xf32, #tpu.memory_space<vmem>>, vector<1x1x8x18xf32>,
    %c9 = arith.constant 9 : index
    %81 = memref.load %arg2[%c9] : memref<24xf32, #tpu.memory_space<smem>>
    %82 = vector.broadcast %81 : f32 to vector<8x18xf32>
    %83 = arith.mulf %8, %82 : vector<8x18xf32>
    %c10 = arith.constant 10 : index
    %84 = memref.load %arg2[%c10] : memref<24xf32, #tpu.memory_space<smem>>
    %85 = vector.broadcast %84 : f32 to vector<8x18xf32>
    %86 = arith.mulf %11, %85 : vector<8x18xf32>
    %87 = arith.addf %83, %86 : vector<8x18xf32>
    %c11 = arith.constant 11 : index
    %88 = memref.load %arg2[%c11] : memref<24xf32, #tpu.memory_space<smem>>
    %89 = vector.broadcast %88 : f32 to vector<8x18xf32>
    %90 = arith.mulf %14, %89 : vector<8x18xf32>
    %91 = arith.addf %87, %90 : vector<8x18xf32>
    %c3_25 = arith.constant 3 : index
    %92 = memref.load %arg3[%c3_25] : memref<8xf32, #tpu.memory_space<smem>>
    %93 = vector.broadcast %92 : f32 to vector<8x18xf32>
    %94 = arith.addf %91, %93 : vector<8x18xf32>
    %cst_26 = arith.constant 0.000000e+00 : f32
    %95 = vector.broadcast %cst_26 : f32 to vector<8x18xf32>
    %96 = arith.cmpf ogt, %94, %95 : vector<8x18xf32>
    %97 = vector.broadcast %3 : f32 to vector<8x18xf32>
    %98 = arith.mulf %94, %97 : vector<8x18xf32>
    %99 = arith.select %96, %94, %98 : vector<8x18xi1>, vector<8x18xf32>
    %c0_27 = arith.constant 0 : index
    %c3_28 = arith.constant 3 : index
    %c0_29 = arith.constant 0 : index
    %c0_30 = arith.constant 0 : index
    %100 = vector.load %arg6[%c0_27, %c3_28, %c0_29, %c0_30] : memref<1x8x8x18xf32, #tpu.memory_space<vmem>>, vector<1x1x8x18xf32>
    %101 = vector.shape_cast %100 : vector<1x1x8x18xf32> to vector<8x18xf32>
    %102 = vector.shape_cast %99 : vector<8x18xf32> to vector<1x1x8x18xf32>
    tpu.vector_store %arg6[%c0_27, %c3_28, %c0_29, %c0_30], %102 {strides = array<i32>} : memref<1x8x8x18xf32, #tpu.memory_space<vmem>>, vector<1x1x8x18xf32>,
    %c12 = arith.constant 12 : index
    %103 = memref.load %arg2[%c12] : memref<24xf32, #tpu.memory_space<smem>>
    %104 = vector.broadcast %103 : f32 to vector<8x18xf32>
    %105 = arith.mulf %8, %104 : vector<8x18xf32>
    %c13 = arith.constant 13 : index
    %106 = memref.load %arg2[%c13] : memref<24xf32, #tpu.memory_space<smem>>
    %107 = vector.broadcast %106 : f32 to vector<8x18xf32>
    %108 = arith.mulf %11, %107 : vector<8x18xf32>
    %109 = arith.addf %105, %108 : vector<8x18xf32>
    %c14 = arith.constant 14 : index
    %110 = memref.load %arg2[%c14] : memref<24xf32, #tpu.memory_space<smem>>
    %111 = vector.broadcast %110 : f32 to vector<8x18xf32>
    %112 = arith.mulf %14, %111 : vector<8x18xf32>
    %113 = arith.addf %109, %112 : vector<8x18xf32>
    %c4_31 = arith.constant 4 : index
    %114 = memref.load %arg3[%c4_31] : memref<8xf32, #tpu.memory_space<smem>>
    %115 = vector.broadcast %114 : f32 to vector<8x18xf32>
    %116 = arith.addf %113, %115 : vector<8x18xf32>
    %cst_32 = arith.constant 0.000000e+00 : f32
    %117 = vector.broadcast %cst_32 : f32 to vector<8x18xf32>
    %118 = arith.cmpf ogt, %116, %117 : vector<8x18xf32>
    %119 = vector.broadcast %3 : f32 to vector<8x18xf32>
    %120 = arith.mulf %116, %119 : vector<8x18xf32>
    %121 = arith.select %118, %116, %120 : vector<8x18xi1>, vector<8x18xf32>
    %c0_33 = arith.constant 0 : index
    %c4_34 = arith.constant 4 : index
    %c0_35 = arith.constant 0 : index
    %c0_36 = arith.constant 0 : index
    %122 = vector.load %arg6[%c0_33, %c4_34, %c0_35, %c0_36] : memref<1x8x8x18xf32, #tpu.memory_space<vmem>>, vector<1x1x8x18xf32>
    %123 = vector.shape_cast %122 : vector<1x1x8x18xf32> to vector<8x18xf32>
    %124 = vector.shape_cast %121 : vector<8x18xf32> to vector<1x1x8x18xf32>
    tpu.vector_store %arg6[%c0_33, %c4_34, %c0_35, %c0_36], %124 {strides = array<i32>} : memref<1x8x8x18xf32, #tpu.memory_space<vmem>>, vector<1x1x8x18xf32>,
    %c15 = arith.constant 15 : index
    %125 = memref.load %arg2[%c15] : memref<24xf32, #tpu.memory_space<smem>>
    %126 = vector.broadcast %125 : f32 to vector<8x18xf32>
    %127 = arith.mulf %8, %126 : vector<8x18xf32>
    %c16 = arith.constant 16 : index
    %128 = memref.load %arg2[%c16] : memref<24xf32, #tpu.memory_space<smem>>
    %129 = vector.broadcast %128 : f32 to vector<8x18xf32>
    %130 = arith.mulf %11, %129 : vector<8x18xf32>
    %131 = arith.addf %127, %130 : vector<8x18xf32>
    %c17 = arith.constant 17 : index
    %132 = memref.load %arg2[%c17] : memref<24xf32, #tpu.memory_space<smem>>
    %133 = vector.broadcast %132 : f32 to vector<8x18xf32>
    %134 = arith.mulf %14, %133 : vector<8x18xf32>
    %135 = arith.addf %131, %134 : vector<8x18xf32>
    %c5_37 = arith.constant 5 : index
    %136 = memref.load %arg3[%c5_37] : memref<8xf32, #tpu.memory_space<smem>>
    %137 = vector.broadcast %136 : f32 to vector<8x18xf32>
    %138 = arith.addf %135, %137 : vector<8x18xf32>
    %cst_38 = arith.constant 0.000000e+00 : f32
    %139 = vector.broadcast %cst_38 : f32 to vector<8x18xf32>
    %140 = arith.cmpf ogt, %138, %139 : vector<8x18xf32>
    %141 = vector.broadcast %3 : f32 to vector<8x18xf32>
    %142 = arith.mulf %138, %141 : vector<8x18xf32>
    %143 = arith.select %140, %138, %142 : vector<8x18xi1>, vector<8x18xf32>
    %c0_39 = arith.constant 0 : index
    %c5_40 = arith.constant 5 : index
    %c0_41 = arith.constant 0 : index
    %c0_42 = arith.constant 0 : index
    %144 = vector.load %arg6[%c0_39, %c5_40, %c0_41, %c0_42] : memref<1x8x8x18xf32, #tpu.memory_space<vmem>>, vector<1x1x8x18xf32>
    %145 = vector.shape_cast %144 : vector<1x1x8x18xf32> to vector<8x18xf32>
    %146 = vector.shape_cast %143 : vector<8x18xf32> to vector<1x1x8x18xf32>
    tpu.vector_store %arg6[%c0_39, %c5_40, %c0_41, %c0_42], %146 {strides = array<i32>} : memref<1x8x8x18xf32, #tpu.memory_space<vmem>>, vector<1x1x8x18xf32>,
    %c18 = arith.constant 18 : index
    %147 = memref.load %arg2[%c18] : memref<24xf32, #tpu.memory_space<smem>>
    %148 = vector.broadcast %147 : f32 to vector<8x18xf32>
    %149 = arith.mulf %8, %148 : vector<8x18xf32>
    %c19 = arith.constant 19 : index
    %150 = memref.load %arg2[%c19] : memref<24xf32, #tpu.memory_space<smem>>
    %151 = vector.broadcast %150 : f32 to vector<8x18xf32>
    %152 = arith.mulf %11, %151 : vector<8x18xf32>
    %153 = arith.addf %149, %152 : vector<8x18xf32>
    %c20 = arith.constant 20 : index
    %154 = memref.load %arg2[%c20] : memref<24xf32, #tpu.memory_space<smem>>
    %155 = vector.broadcast %154 : f32 to vector<8x18xf32>
    %156 = arith.mulf %14, %155 : vector<8x18xf32>
    %157 = arith.addf %153, %156 : vector<8x18xf32>
    %c6_43 = arith.constant 6 : index
    %158 = memref.load %arg3[%c6_43] : memref<8xf32, #tpu.memory_space<smem>>
    %159 = vector.broadcast %158 : f32 to vector<8x18xf32>
    %160 = arith.addf %157, %159 : vector<8x18xf32>
    %cst_44 = arith.constant 0.000000e+00 : f32
    %161 = vector.broadcast %cst_44 : f32 to vector<8x18xf32>
    %162 = arith.cmpf ogt, %160, %161 : vector<8x18xf32>
    %163 = vector.broadcast %3 : f32 to vector<8x18xf32>
    %164 = arith.mulf %160, %163 : vector<8x18xf32>
    %165 = arith.select %162, %160, %164 : vector<8x18xi1>, vector<8x18xf32>
    %c0_45 = arith.constant 0 : index
    %c6_46 = arith.constant 6 : index
    %c0_47 = arith.constant 0 : index
    %c0_48 = arith.constant 0 : index
    %166 = vector.load %arg6[%c0_45, %c6_46, %c0_47, %c0_48] : memref<1x8x8x18xf32, #tpu.memory_space<vmem>>, vector<1x1x8x18xf32>
    %167 = vector.shape_cast %166 : vector<1x1x8x18xf32> to vector<8x18xf32>
    %168 = vector.shape_cast %165 : vector<8x18xf32> to vector<1x1x8x18xf32>
    tpu.vector_store %arg6[%c0_45, %c6_46, %c0_47, %c0_48], %168 {strides = array<i32>} : memref<1x8x8x18xf32, #tpu.memory_space<vmem>>, vector<1x1x8x18xf32>,
    %c21 = arith.constant 21 : index
    %169 = memref.load %arg2[%c21] : memref<24xf32, #tpu.memory_space<smem>>
    %170 = vector.broadcast %169 : f32 to vector<8x18xf32>
    %171 = arith.mulf %8, %170 : vector<8x18xf32>
    %c22 = arith.constant 22 : index
    %172 = memref.load %arg2[%c22] : memref<24xf32, #tpu.memory_space<smem>>
    %173 = vector.broadcast %172 : f32 to vector<8x18xf32>
    %174 = arith.mulf %11, %173 : vector<8x18xf32>
    %175 = arith.addf %171, %174 : vector<8x18xf32>
    %c23 = arith.constant 23 : index
    %176 = memref.load %arg2[%c23] : memref<24xf32, #tpu.memory_space<smem>>
    %177 = vector.broadcast %176 : f32 to vector<8x18xf32>
    %178 = arith.mulf %14, %177 : vector<8x18xf32>
    %179 = arith.addf %175, %178 : vector<8x18xf32>
    %c7_49 = arith.constant 7 : index
    %180 = memref.load %arg3[%c7_49] : memref<8xf32, #tpu.memory_space<smem>>
    %181 = vector.broadcast %180 : f32 to vector<8x18xf32>
    %182 = arith.addf %179, %181 : vector<8x18xf32>
    %cst_50 = arith.constant 0.000000e+00 : f32
    %183 = vector.broadcast %cst_50 : f32 to vector<8x18xf32>
    %184 = arith.cmpf ogt, %182, %183 : vector<8x18xf32>
    %185 = vector.broadcast %3 : f32 to vector<8x18xf32>
    %186 = arith.mulf %182, %185 : vector<8x18xf32>
    %187 = arith.select %184, %182, %186 : vector<8x18xi1>, vector<8x18xf32>
    %c0_51 = arith.constant 0 : index
    %c7_52 = arith.constant 7 : index
    %c0_53 = arith.constant 0 : index
    %c0_54 = arith.constant 0 : index
    %188 = vector.load %arg6[%c0_51, %c7_52, %c0_53, %c0_54] : memref<1x8x8x18xf32, #tpu.memory_space<vmem>>, vector<1x1x8x18xf32>
    %189 = vector.shape_cast %188 : vector<1x1x8x18xf32> to vector<8x18xf32>
    %190 = vector.shape_cast %187 : vector<8x18xf32> to vector<1x1x8x18xf32>
    tpu.vector_store %arg6[%c0_51, %c7_52, %c0_53, %c0_54], %190 {strides = array<i32>} : memref<1x8x8x18xf32, #tpu.memory_space<vmem>>, vector<1x1x8x18xf32>,
    return
  }
  func.func @transform_0(%arg0: i32, %arg1: i32) -> i32 {
    %c0_i32 = arith.constant 0 : i32
    %c0_i32_0 = arith.constant 0 : i32
    return %c0_i32 : i32
  }
  func.func @transform_1(%arg0: i32, %arg1: i32) -> i32 {
    %c0_i32 = arith.constant 0 : i32
    %c0_i32_0 = arith.constant 0 : i32
    return %c0_i32 : i32
  }
  func.func @transform_2(%arg0: i32, %arg1: i32) -> i32 {
    %c0_i32 = arith.constant 0 : i32
    %c0_i32_0 = arith.constant 0 : i32
    return %c0_i32 : i32
  }
  func.func @transform_3(%arg0: i32, %arg1: i32) -> (i32, i32, i32, i32) {
    %c0_i32 = arith.constant 0 : i32
    %c0_i32_0 = arith.constant 0 : i32
    %c0_i32_1 = arith.constant 0 : i32
    %c0_i32_2 = arith.constant 0 : i32
    return %arg0, %c0_i32, %c0_i32_0, %c0_i32_1 : i32, i32, i32, i32
  }
  func.func @transform_4(%arg0: i32, %arg1: i32) -> (i32, i32, i32, i32) {
    %c0_i32 = arith.constant 0 : i32
    %c0_i32_0 = arith.constant 0 : i32
    %c0_i32_1 = arith.constant 0 : i32
    return %arg0, %c0_i32, %arg1, %c0_i32_0 : i32, i32, i32, i32
  }
}

</mosaic_0001>

<bundles_post_ra>
// kernel: model_forward.1
= control target key start
LH: loop header
LB: loop body
LE: loop exit
PB: predicated region body
PF: predicated region fallthrough
CT: control target
= control target key end

     0   :  { %s1322_s0 = inlined_call_operand.vmem [shape: f32[24], index: 0, kind: input, shape index: {}]   ;;  %s1323_s1 = inlined_call_operand.vmem [shape: f32[8], index: 1, kind: input, shape index: {}]   ;;  %s1324_s2 = inlined_call_operand.<no memory space> [shape: f32[1], index: 2, kind: input, shape index: {}]   ;;  %s1325_s3 = inlined_call_operand.hbm [shape: f32[2,3,16,16], index: 3, kind: input, shape index: {}]   ;;  %s1326_s4 = inlined_call_operand.vmem [shape: f32[2,8,18,18], index: 4, kind: output, shape index: {}]  }
   0x1   :  { %1330 = sst [smem:[#allocation17_spill]] %s1322_s0 }
   0x2   :  { %1331 = sst [smem:[#allocation18_spill]] %s1323_s1 }
   0x3   :  { %9 = sst [smem:[#allocation3]] %s1324_s2 }
   0x4   :  { %10 = vsyncpa [#allocation6], 0 }
   0x5   :  { %11 = vsyncpa [#allocation8], 0 }
   0x6   :  { %12 = vsyncpa [#allocation5], 0 }
   0x7   :  { %14 = vsyncpa [#allocation5 + $0x1], 0  ;;  %s1015_s17 = smov 0   ;;  %s1017_s18 = smov 0  }
   0x8   :  { %s1019_s19 = smov 0   ;;  %s1021_s20 = smov 0  }
   0x9   :  { %s1023_s21 = smov 0   ;;  %s1025_s22 = smov 0  }
   0xa   :  { %s1027_s23 = smov 0   ;;  %s1029_s24 = smov 0  }
   0xb   :  { %s1031_s2 = smov 0   ;;  %s1033_s25 = smov 0  }
   0xc LB: > { %1332 = sst [smem:[#allocation14_spill]] %s971_s24  ;;  %s651_s26 = sadd.s32 4294967295, %s979_s25   ;;  %s979_s25 = sphi %s1033_s25, %s1356_s25   ;;  %s975_s2 = sphi %s1031_s2, %s1355_s2   ;;  %s971_s24 = sphi %s1029_s24, %s1348_s24   ;;  %s967_s23 = sphi %s1027_s23, %s1354_s23   ;;  %s963_s22 = sphi %s1025_s22, %s1347_s22   ;;  %s959_s21 = sphi %s1023_s21, %s1353_s21   ;;  %s955_s20 = sphi %s1021_s20, %s1352_s20   ;;  %s951_s19 = sphi %s1019_s19, %s1351_s19   ;;  %s947_s18 = sphi %s1017_s18, %s1350_s18   ;;  %s943_s17 = sphi %s1015_s17, %s1349_s17  }
   0xd   : > { %1333 = sst [smem:[#allocation15_spill]] %s979_s25  ;;  %p109_p0 = scmp.ne.s32.totalorder %s959_s21, %s955_s20 }
   0xe   : > { %p110_p1 = scmp.eq.s32.totalorder %s979_s25, 0  ;;  %p115_p2 = scmp.ne.s32.totalorder %s955_s20, %s951_s19 }
   0xf   : > { %p1069_p3 = scmp.eq.s32.totalorder %s651_s26, 0  ;;  %p140_p6 = scmp.ne.s32.totalorder %s947_s18, %s943_s17 }
  0x10   : > { %p1073_p4 = por %p110_p1, %p109_p0  ;;  %p141_p7 = scmp.eq.s32.totalorder %s651_s26, 5 }
  0x11   : > { %p1080_p5 = por %p1069_p3, %p115_p2  ;;  %p653_p8 = scmp.ge.s32.totalorder %s979_s25, 1 }
  0x12   : > { %p154_p9 = scmp.lt.s32.totalorder %s979_s25, 7  ;;  %p1088_p10 = por %p141_p7, %p140_p6 }
  0x13   : > { %s1338_s0 = sld [smem:[#allocation17_spill]]  ;;  %p740_p13 = scmp.lt.s32.totalorder %s979_s25, 6 }
  0x14   : > { %p1095_p11 = pnand %p653_p8, %p154_p9  ;;  %s1340_s1 = sld [smem:[#allocation18_spill]] }
  0x15   : > { %p1109_p1 = pnand %p740_p13, %p1073_p4  ;;  %s981_s15 = smov [#allocation4]  }
  0x16   : > { %p727_p12 = pneg %p1095_p11  ;;  %s982_s16 = smov [#allocation7]  }
  0x17   : > { %s29_s19 = sadd.s32 1, %s971_s24  ;;  %s32_s26 = sadd.s32 1, %s975_s2 }
  0x18   : > { %p728_p0 = pnand %p727_p12, %p1069_p3  ;;  %p30_p2 = scmp.ge.s32.totalorder %s29_s19, 3 }
  0x19   : > { %s166_s9 = sshll.u32 %s1338_s0, 4  ;;  %s190_s7 = sand.u32 1, %s959_s21   ;;  %s167_s9 = int_to_ptr.vmem [resolvable:$true] %s166_s9 }
  0x1a   : > { %s176_s13 = sshll.u32 %s1340_s1, 4  ;;  %s714_s8 = smul.u32 48, %s975_s2  ;;  %s177_s13 = int_to_ptr.vmem [resolvable:$true] %s176_s13 }
  0x1b   : > { %730 = dma.vmem_to_smem (!%p728_p0), %s167_s9, 16, %s981_s15, [#allocation6]  }
  0x1c   : > { %733 = dma.vmem_to_smem (!%p728_p0), %s177_s13, 16, %s982_s16, [#allocation8]  }
  0x1d   : > { %s1358_s19 = smov (%p30_p2, %s29_s19), 0  ;;  %s1360_s26 = smov (!%p30_p2, %s32_s26), %s975_s2 }
  0x1e   : > { %1342 = sst [smem:[#allocation16_spill]] %s1358_s19  ;;  %s126_s29 = ssub.s32 %s971_s24, %s1358_s19 }
  0x1f   : > { %p34_p4 = scmp.ge.s32.totalorder %s1360_s26, 2  ;;  %s713_s11 = smul.u32 48, %s190_s7 }
  0x20   : > { %s199_s13 = scalar_lea.hbm %s1325_s3, %s714_s8  ;;  %s1343_s1 = sadd.s32 1, %s959_s21 }
  0x21   : > { %s1362_s26 = smov (%p34_p4, %s1360_s26), 0  ;;  %s200_s15 = sshll.u32 %s199_s13, 4  ;;  %s201_s15 = int_to_ptr.hbm [resolvable:$true] %s200_s15 }
  0x22   : > { %s99_s16 = ssub.s32 %s975_s2, %s1362_s26  ;;  %s194_s27 = scalar_lea.vmem [#allocation9], %s713_s11 }
  0x23   : > { %p100_p6 = scmp.eq.s32.totalorder %s99_s16, 0  ;;  %s127_s30 = sor.u32 %s126_s29, %s99_s16 }
  0x24   : > { %p128_p7 = scmp.eq.s32.totalorder %s127_s30, 0  ;;  %s202_s0 = sshll.u32 %s194_s27, 4  ;;  %s203_s0 = int_to_ptr.vmem [resolvable:$true] %s202_s0 }
  0x25   : > { %s1132_s19 = scalar_select %p100_p6, %s959_s21, %s1343_s1  }
  0x26   : > { %s1344_s24 = sadd.s32 1, %s947_s18  ;;  %s191_s8 = scalar_lea.sflag [#allocation5], %s190_s7 }
  0x27   : > { %s1137_s25 = scalar_select %p128_p7, %s947_s18, %s1344_s24  }
  0x28   : > { %s983_s9 = smov 128   ;;  %s984_s12 = smov 8  }
  0x29   : > { %737 = dma.hbm_to_vmem [thread:$0]  (!%p1109_p1), %s201_s15, 768, %s203_s0, %s191_s8, %s983_s9, %s983_s9, %s984_s12  }
  0x2a   : > { %214 = sbr.rel (%p1095_p11) target bundleno = 248 (0xf8), region = 36 }
  0x2f   : > { %930 = dma.done.wait (%p1069_p3), [#allocation6], 16  }
  0x30   : > { %932 = vsyncadd (%p1069_p3), [#allocation6], 4294967280 }
  0x31   : > { %934 = dma.done.wait (%p1069_p3), [#allocation8], 16  }
  0x32   : > { %936 = vsyncadd (%p1069_p3), [#allocation8], 4294967280  ;;  %s226_s1 = sand.u32 1, %s955_s20  }
  0x33   : > { %s715_s24 = smul.u32 48, %s226_s1  ;;  %s227_s0 = scalar_lea.sflag [#allocation5], %s226_s1 }
  0x35   : > { %s230_s27 = scalar_lea.vmem [#allocation9], %s715_s24 }
  0x36   : > { %938 = dma.done.wait (%p1080_p5), %s227_s0, 768  }
  0x37   : > { %940 = vsyncadd (%p1080_p5), %s227_s0, 4294966528 }
  0x38   : > { %236 = sfence }
  0x39   : > { %s253_s30 = sand.u32 1, %s943_s17   ;;  %p662_p8 = scmp.ne.s32.totalorder %s963_s22, 0 }
  0x3a   : > { %s661_s10 = sshll.u32 %s253_s30, 6  ;;  %s985_s28 = smov (!%p662_p8), 1  }
  0x3b   : > { %s1157_s14 = scalar_lea.vmem [#allocation10], %s661_s10  ;;  %259 = sbr.rel (%p662_p8) target bundleno = 190 (0xbe), region = 52 }
  0x40   : > { %v663_v0 = vld [vmem:[%s230_s27 + $0x10] sm:$0xff]  ;;  %v270_v1 = vld [vmem:[%s230_s27] sm:$0xff]  ;;  %v664_v3 = vld [vmem:[%s230_s27 + $0x18] sm:$0xff]  ;;  %vm260_vm0 = vcmask 146432   ;;  %v986_v6 = vmov 0.0   ;;  %vm280_vm1 = vcmask 138248  }
  0x41   : > { %288 = vrot.lane.b32.xlu1 %v663_v0, %s985_s28  ;;  %274 = vrot.lane.b32.xlu0 %v270_v1, %s985_s28  ;;  %v665_v2 = vld [vmem:[%s230_s27 + $0x20] sm:$0xff]  ;;  %v271_v4 = vld [vmem:[%s230_s27 + $0x8] sm:$0xff]  ;;  %267 = vst.msk [vmem:[#allocation2 + $0x30] sm:$0xff] %vm260_vm0, %v986_v6 }
  0x42   : > { %302 = vrot.lane.b32.xlu2 %v665_v2, %s985_s28  ;;  %v666_v5 = vld [vmem:[%s230_s27 + $0x28] sm:$0xff]  ;;  %268 = vst.msk [vmem:[#allocation2 + $0x38] sm:$0xff] %vm260_vm0, %v986_v6 }
  0x43   : > { %261 = vst.msk [vmem:[#allocation2] sm:$0xff] %vm260_vm0, %v986_v6 }
  0x44   : > { %262 = vst.msk [vmem:[#allocation2 + $0x8] sm:$0xff] %vm260_vm0, %v986_v6 }
  0x45   : > { %263 = vst.msk [vmem:[#allocation2 + $0x10] sm:$0xff] %vm260_vm0, %v986_v6 }
  0x46   : > { %264 = vst.msk [vmem:[#allocation2 + $0x18] sm:$0xff] %vm260_vm0, %v986_v6 }
  0x47   : > { %265 = vst.msk [vmem:[#allocation2 + $0x20] sm:$0xff] %vm260_vm0, %v986_v6 }
  0x48   : > { %266 = vst.msk [vmem:[#allocation2 + $0x28] sm:$0xff] %vm260_vm0, %v986_v6 }
  0x49   : > { %290 = vrot.lane.b32.xlu1 %v664_v3, %s985_s28  ;;  %276 = vrot.lane.b32.xlu0 %v271_v4, %s985_s28  ;;  %269 = vst.msk [vmem:[#allocation2 + $0x40] sm:$0xff] %vm260_vm0, %v986_v6 }
  0x4a   : > { %304 = vrot.lane.b32.xlu2 %v666_v5, %s985_s28 }
  0x9c   : > { %v303_v7 = vpop.permute.xlu2 %302 }
  0x9d   : > { %309 = vst.msk [vmem:[#allocation2 + $0x31] sm:$0xff] %vm280_vm1, %v303_v7 }
  0xa4   : > { %v305_v8 = vpop.permute.xlu2 %304 }
  0xa5   : > { %310 = vst.msk [vmem:[#allocation2 + $0x39] sm:$0xff] %vm280_vm1, %v305_v8 }
  0xb3   : > { %v289_v9 = vpop.permute.xlu1 %288  ;;  %v275_v10 = vpop.permute.xlu0 %274 }
  0xb4   : > { %295 = vst.msk [vmem:[#allocation2 + $0x19] sm:$0xff] %vm280_vm1, %v289_v9 }
  0xb5   : > { %281 = vst.msk [vmem:[#allocation2 + $0x1] sm:$0xff] %vm280_vm1, %v275_v10 }
  0xbb   : > { %v291_v11 = vpop.permute.xlu1 %290  ;;  %v277_v12 = vpop.permute.xlu0 %276 }
  0xbc   : > { %296 = vst.msk [vmem:[#allocation2 + $0x21] sm:$0xff] %vm280_vm1, %v291_v11 }
  0xbd   : > { %282 = vst.msk [vmem:[#allocation2 + $0x9] sm:$0xff] %vm280_vm1, %v277_v12 }
  0xbe PF: > { %s1160_s17 = sld [smem:[#allocation3]]  ;;  %s667_s5 = sshll.u32 %s963_s22, 3  ;;  %vm339_vm2 = vcmask 146432  }
  0xbf   : > { %s321_s7 = sld [smem:[#allocation4]]  ;;  %s313_s15 = scalar_lea.vmem [#allocation2], %s667_s5 }
  0xc0   : > { %s672_s29 = sld [smem:[#allocation4 + $0x1]] }
  0xc1   : > { %s673_s11 = sld [smem:[#allocation4 + $0x2]] }
  0xc2   : > { %s1163_s13 = sld [smem:[#allocation7]] }
  0xc3   : > { %s674_s16 = sld [smem:[#allocation4 + $0x3]] }
  0xc4   : > { %v1165_v13 = vld [vmem:[%s313_s15] sm:$0xff]  ;;  %v1167_v14 = vld [vmem:[%s313_s15 + $0x18] sm:$0xff]  ;;  %s675_s8 = sld [smem:[#allocation4 + $0x4]]  ;;  %v1169_v15 = vld [vmem:[%s313_s15 + $0x30] sm:$0xff]  ;;  %v1186_v30 = vstv %s1160_s17 }
  0xc5   : > { %v322_v16 = vstv %s321_s7  ;;  %s676_s9 = sld [smem:[#allocation4 + $0x5]] }
  0xc6   : > { %v323_v17 = vmul.f32 %v322_v16, %v1165_v13  ;;  %v325_v18 = vstv %s672_s29  ;;  %s1172_s12 = sld [smem:[#allocation7 + $0x1]] }
  0xc7   : > { %v326_v19 = vmul.f32 %v1167_v14, %v325_v18  ;;  %v329_v20 = vstv %s673_s11  ;;  %s679_s1 = sld [smem:[#allocation4 + $0x6]] }
  0xc8   : > { %v330_v21 = vmul.f32 %v1169_v15, %v329_v20  ;;  %s680_s24 = sld [smem:[#allocation4 + $0x7]]  ;;  %v333_v24 = vstv %s1163_s13 }
  0xc9   : > { %v327_v22 = vadd.f32 %v326_v19, %v323_v17  ;;  %v342_v23 = vstv %s674_s16  ;;  %s1176_s0 = sld [smem:[#allocation4 + $0x8]] }
  0xca   : > { %v343_v25 = vmul.f32 %v342_v23, %v1165_v13  ;;  %v345_v26 = vstv %s675_s8  ;;  %s1180_s27 = sld [smem:[#allocation7 + $0x2]] }
  0xcb   : > { %v331_v27 = vadd.f32 %v330_v21, %v327_v22  ;;  %v346_v28 = vmul.f32 %v1167_v14, %v345_v26  ;;  %v349_v29 = vstv %s676_s9  ;;  %s1183_s30 = sld [smem:[#allocation4 + $0x9]] }
  0xcc   : > { %v350_v31 = vmul.f32 %v1169_v15, %v349_v29  ;;  %s1189_s10 = sld [smem:[#allocation4 + $0xa]]  ;;  %v353_v35 = vstv %s1172_s12 }
  0xcd   : > { %v334_v32 = vadd.f32 %v333_v24, %v331_v27  ;;  %v347_v33 = vadd.f32 %v346_v28, %v343_v25  ;;  %v361_v34 = vstv %s679_s1  ;;  %s1191_s28 = sld [smem:[#allocation4 + $0xb]] }
  0xce   : > { %v362_v36 = vmul.f32 %v361_v34, %v1165_v13  ;;  %v364_v37 = vstv %s680_s24  ;;  %s1195_s17 = sld [smem:[#allocation7 + $0x3]] }
  0xcf   : > { %vm335_vm3 = vcmp.gt.f32.partialorder %v334_v32, 0.0  ;;  %v337_v38 = vmul.f32 %v1186_v30, %v334_v32  ;;  %v351_v39 = vadd.f32 %v350_v31, %v347_v33  ;;  %v365_v40 = vmul.f32 %v1167_v14, %v364_v37  ;;  %s689_s5 = sld [smem:[#allocation4 + $0xc]] }
  0xd0   : > { %v368_v41 = vstv %s1176_s0  ;;  %s1200_s7 = sld [smem:[#allocation4 + $0xd]]  ;;  %v372_v46 = vstv %s1180_s27 }
  0xd1   : > { %v338_v42 = vsel %vm335_vm3, %v334_v32, %v337_v38  ;;  %v354_v43 = vadd.f32 %v353_v35, %v351_v39  ;;  %v366_v44 = vadd.f32 %v365_v40, %v362_v36  ;;  %v369_v45 = vmul.f32 %v1169_v15, %v368_v41  ;;  %s1203_s29 = sld [smem:[#allocation4 + $0xe]] }
  0xd2   : > { %340 = vst.msk [vmem:[%s1157_s14] sm:$0xff] %vm339_vm2, %v338_v42  ;;  %v380_v47 = vstv %s1183_s30  ;;  %v383_v48 = vstv %s1189_s10  ;;  %s1210_s11 = sld [smem:[#allocation7 + $0x4]] }
  0xd3   : > { %vm355_vm4 = vcmp.gt.f32.partialorder %v354_v43, 0.0  ;;  %v356_v49 = vmul.f32 %v354_v43, %v1186_v30  ;;  %v370_v50 = vadd.f32 %v369_v45, %v366_v44  ;;  %v381_v51 = vmul.f32 %v380_v47, %v1165_v13  ;;  %s1214_s13 = sld [smem:[#allocation4 + $0xf]] }
  0xd4   : > { %v384_v52 = vmul.f32 %v1167_v14, %v383_v48  ;;  %v387_v53 = vstv %s1191_s28  ;;  %s1218_s15 = sld [smem:[#allocation4 + $0x10]]  ;;  %v391_v59 = vstv %s1195_s17  ;;  %s716_s28 = smul.u32 (%p1088_p10), 24, %s967_s23 }
  0xd5   : > { %v357_v54 = vsel %vm355_vm4, %v354_v43, %v356_v49  ;;  %v373_v55 = vadd.f32 %v372_v46, %v370_v50  ;;  %v388_v56 = vmul.f32 %v1169_v15, %v387_v53  ;;  %v399_v57 = vstv %s689_s5  ;;  %s1221_s16 = sld [smem:[#allocation4 + $0x11]] }
  0xd6   : > { %678 = vst.msk [vmem:[%s1157_s14 + $0x8] sm:$0xff] %vm339_vm2, %v357_v54  ;;  %v385_v58 = vadd.f32 %v384_v52, %v381_v51  ;;  %v400_v60 = vmul.f32 %v399_v57, %v1165_v13  ;;  %v402_v61 = vstv %s1200_s7  ;;  %s1228_s8 = sld [smem:[#allocation7 + $0x5]]  ;;  %s482_s17 = sadd.s32 (%p1088_p10), %s963_s22, %s716_s28 }
  0xd7   : > { %vm374_vm5 = vcmp.gt.f32.partialorder %v373_v55, 0.0  ;;  %v375_v62 = vmul.f32 %v373_v55, %v1186_v30  ;;  %v403_v63 = vmul.f32 %v1167_v14, %v402_v61  ;;  %v406_v0 = vstv %s1203_s29  ;;  %s699_s9 = sld [smem:[#allocation4 + $0x12]]  ;;  %s710_s5 = sshll.u32 (%p1088_p10), %s482_s17, 3 }
  0xd8   : > { %v389_v1 = vadd.f32 %v388_v56, %v385_v58  ;;  %v407_v2 = vmul.f32 %v1169_v15, %v406_v0  ;;  %s1234_s12 = sld [smem:[#allocation4 + $0x13]]  ;;  %v410_v7 = vstv %s1210_s11  ;;  %s484_s6 = scalar_lea.vmem (%p1088_p10), %s1326_s4, %s710_s5 }
  0xd9   : > { %v376_v3 = vsel %vm374_vm5, %v373_v55, %v375_v62  ;;  %v404_v4 = vadd.f32 %v403_v63, %v400_v60  ;;  %v418_v5 = vstv %s1214_s13  ;;  %s1237_s1 = sld [smem:[#allocation4 + $0x14]] }
  0xda   : > { %683 = vst.msk [vmem:[%s1157_s14 + $0x10] sm:$0xff] %vm339_vm2, %v376_v3  ;;  %v392_v6 = vadd.f32 %v391_v59, %v389_v1  ;;  %v419_v8 = vmul.f32 %v418_v5, %v1165_v13  ;;  %v421_v9 = vstv %s1218_s15  ;;  %s1244_s24 = sld [smem:[#allocation7 + $0x6]] }
  0xdb   : > { %v408_v10 = vadd.f32 %v407_v2, %v404_v4  ;;  %v422_v11 = vmul.f32 %v1167_v14, %v421_v9  ;;  %v425_v12 = vstv %s1221_s16  ;;  %s1248_s0 = sld [smem:[#allocation4 + $0x15]] }
  0xdc   : > { %vm393_vm6 = vcmp.gt.f32.partialorder %v392_v6, 0.0  ;;  %v394_v16 = vmul.f32 %v392_v6, %v1186_v30  ;;  %v426_v17 = vmul.f32 %v1169_v15, %v425_v12  ;;  %s705_s27 = sld [smem:[#allocation4 + $0x16]]  ;;  %v429_v22 = vstv %s1228_s8 }
  0xdd   : > { %v411_v18 = vadd.f32 %v410_v7, %v408_v10  ;;  %v423_v19 = vadd.f32 %v422_v11, %v419_v8  ;;  %v437_v20 = vstv %s699_s9  ;;  %s706_s30 = sld [smem:[#allocation4 + $0x17]] }
  0xde   : > { %v395_v21 = vsel %vm393_vm6, %v392_v6, %v394_v16  ;;  %v438_v23 = vmul.f32 %v437_v20, %v1165_v13  ;;  %v440_v24 = vstv %s1234_s12  ;;  %s707_s10 = sld [smem:[#allocation7 + $0x7]] }
  0xdf   : > { %688 = vst.msk [vmem:[%s1157_s14 + $0x18] sm:$0xff] %vm339_vm2, %v395_v21  ;;  %vm412_vm7 = vcmp.gt.f32.partialorder %v411_v18, 0.0  ;;  %v413_v25 = vmul.f32 %v411_v18, %v1186_v30  ;;  %v427_v26 = vadd.f32 %v426_v17, %v423_v19  ;;  %v441_v27 = vmul.f32 %v1167_v14, %v440_v24 }
  0xe0   : > { %v444_v28 = vstv %s1237_s1  ;;  %v448_v34 = vstv %s1244_s24 }
  0xe1   : > { %v414_v29 = vsel %vm412_vm7, %v411_v18, %v413_v25  ;;  %v430_v31 = vadd.f32 %v429_v22, %v427_v26  ;;  %v442_v32 = vadd.f32 %v441_v27, %v438_v23  ;;  %v445_v33 = vmul.f32 %v1169_v15, %v444_v28  ;;  %v531_v51 = vld [vmem:[%s1157_s14 + $0x10] sm:$0xff] (%p1088_p10) }
  0xe2   : > { %693 = vst.msk [vmem:[%s1157_s14 + $0x20] sm:$0xff] %vm339_vm2, %v414_v29  ;;  %v456_v35 = vstv %s1248_s0  ;;  %v459_v36 = vstv %s705_s27 }
  0xe3   : > { %vm431_vm8 = vcmp.gt.f32.partialorder %v430_v31, 0.0  ;;  %v432_v37 = vmul.f32 %v430_v31, %v1186_v30  ;;  %v446_v38 = vadd.f32 %v445_v33, %v442_v32  ;;  %v457_v39 = vmul.f32 %v456_v35, %v1165_v13  ;;  %532 = vst [vmem:[%s484_s6 + $0x30] sm:$0xff] (%p1088_p10), %v531_v51 }
  0xe4   : > { %v460_v40 = vmul.f32 %v1167_v14, %v459_v36  ;;  %v463_v41 = vstv %s706_s30  ;;  %v467_v47 = vstv %s707_s10 }
  0xe5   : > { %v433_v42 = vsel %vm431_vm8, %v430_v31, %v432_v37  ;;  %v449_v43 = vadd.f32 %v448_v34, %v446_v38  ;;  %v464_v44 = vmul.f32 %v1169_v15, %v463_v41  ;;  %v527_v15 = vld [vmem:[%s1157_s14] sm:$0xff] (%p1088_p10) }
  0xe6   : > { %698 = vst.msk [vmem:[%s1157_s14 + $0x28] sm:$0xff] %vm339_vm2, %v433_v42  ;;  %v461_v45 = vadd.f32 %v460_v40, %v457_v39  ;;  %v533_v52 = vld [vmem:[%s1157_s14 + $0x18] sm:$0xff] (%p1088_p10) }
  0xe7   : > { %vm450_vm9 = vcmp.gt.f32.partialorder %v449_v43, 0.0  ;;  %v451_v46 = vmul.f32 %v449_v43, %v1186_v30  ;;  %528 = vst [vmem:[%s484_s6] sm:$0xff] (%p1088_p10), %v527_v15 }
  0xe8   : > { %v465_v48 = vadd.f32 %v464_v44, %v461_v45  ;;  %534 = vst [vmem:[%s484_s6 + $0x48] sm:$0xff] (%p1088_p10), %v533_v52 }
  0xe9   : > { %v452_v49 = vsel %vm450_vm9, %v449_v43, %v451_v46  ;;  %v535_v53 = vld [vmem:[%s1157_s14 + $0x20] sm:$0xff] (%p1088_p10) }
  0xea   : > { %703 = vst.msk [vmem:[%s1157_s14 + $0x30] sm:$0xff] %vm339_vm2, %v452_v49  ;;  %v468_v13 = vadd.f32 %v467_v47, %v465_v48 }
  0xeb   : > { %480 = sbr.rel (!%p1088_p10) target bundleno = 248 (0xf8), region = 56  ;;  %536 = vst [vmem:[%s484_s6 + $0x60] sm:$0xff] (%p1088_p10), %v535_v53 }
  0xec   : > { %vm469_vm10 = vcmp.gt.f32.partialorder %v468_v13, 0.0  ;;  %v470_v14 = vmul.f32 %v468_v13, %v1186_v30  ;;  %v529_v30 = vld [vmem:[%s1157_s14 + $0x8] sm:$0xff] (%p1088_p10) }
  0xed   : > { %530 = vst [vmem:[%s484_s6 + $0x18] sm:$0xff] (%p1088_p10), %v529_v30  ;;  %v537_v54 = vld [vmem:[%s1157_s14 + $0x28] sm:$0xff] (%p1088_p10) }
  0xee   : > { %v471_v50 = vsel %vm469_vm10, %v468_v13, %v470_v14  ;;  %538 = vst [vmem:[%s484_s6 + $0x78] sm:$0xff] (%p1088_p10), %v537_v54 }
  0xef   : > { %708 = vst.msk [vmem:[%s1157_s14 + $0x38] sm:$0xff] %vm339_vm2, %v471_v50 }
  0xf1   : > { %v539_v55 = vld [vmem:[%s1157_s14 + $0x30] sm:$0xff] }
  0xf2   : > { %540 = vst [vmem:[%s484_s6 + $0x90] sm:$0xff] %v539_v55 }
  0xf6   : > { %v541_v56 = vld [vmem:[%s1157_s14 + $0x38] sm:$0xff] }
  0xf7   : > { %542 = vst [vmem:[%s484_s6 + $0xa8] sm:$0xff] %v541_v56 }
  0xf8 PF: > { %s1345_s22 = sld [smem:[#allocation15_spill]]  ;;  %s1346_s23 = smov %s1132_s19 }
  0xf9   : > { %s1348_s24 = sld [smem:[#allocation16_spill]]  ;;  %s1349_s17 = smov %s947_s18 }
  0xfa   : > { %s1350_s18 = smov %s1137_s25  ;;  %s1351_s19 = smov %s955_s20 }
  0xfb   : > { %s1352_s20 = smov %s959_s21  ;;  %s1353_s21 = smov %s1346_s23 }
  0xfc   : > { %s1354_s23 = smov %s975_s2  ;;  %s1355_s2 = smov %s1362_s26 }
  0xfe   : > { %s20_s11 = sadd.s32 1, %s1345_s22   ;;  %s1347_s22 = sld [smem:[#allocation14_spill]] }
  0xff   : > { %p17_p3 = scmp.ge.s32.totalorder %s20_s11, 8   ;;  %s1356_s25 = smov %s20_s11 }
 0x101   :  { %19 = sbr.rel (!%p17_p3) target bundleno = 12 (0xc), region = 141 }
 0x106   :  { %558 = vsyncpa [#allocation5], 1 }
 0x107   :  { %560 = vsyncpa [#allocation5 + $0x1], 1 }
 0x108   :  { %561 = vsyncpa [#allocation6], 1 }
 0x109   :  { %563 = vsyncpa [#allocation6 + $0x1], 1 }
 0x10a   :  { %564 = vsyncpa [#allocation8], 1 }

</bundles_post_ra>
